<compile_context>
chip_gen: v7x
topology: tpu7x:2x2x1
jax: 0.10.0
libtpu: 0.0.40
codegen_flags: <defaults>
</compile_context>

<pallas_src>
import jax
import jax.numpy as jnp
from jax import lax
from jax.experimental import pallas as pl
from jax.experimental.pallas import tpu as pltpu


def _conv_gemm_kernel(w_ref, a_ref, b_ref, o_ref):
    # w_ref: (C_out, K)   flattened conv weight, K-order = (kh, kw, c_in)
    # a_ref: (K, M)       im2col patch matrix   (M = N*H_out*W_out, lane-dense)
    # b_ref: (C_out, 1)   fused bias (bias - x.shape[2])
    # o_ref: (C_out, M)   lane-dense output
    acc = jnp.dot(w_ref[...], a_ref[...], preferred_element_type=jnp.float32)
    o_ref[...] = (acc + b_ref[...]).astype(o_ref.dtype)


def _conv2d_s2_p1_minus_h(x_nchw, weight, bias):
    """x_nchw: (N, C_in, H, W); weight: (C_out, C_in, 3, 3); bias: (C_out,)."""
    N, C_in, H, W = x_nchw.shape
    C_out = weight.shape[0]
    KH = KW = 3
    stride = 2
    H_out = (H + 2 * 1 - KH) // stride + 1
    W_out = (W + 2 * 1 - KW) // stride + 1
    sub_const = float(H)  # x.shape[2] in the PyTorch module (static under jit)
    M = N * H_out * W_out
    K = C_in * KH * KW

    # ---- glue (fused by jit): pad in NCHW, 9 stride-2 taps, lane-dense K x M ----
    x_pad = jnp.pad(x_nchw, ((0, 0), (0, 0), (1, 1), (1, 1)))  # (N, C, H+2, W+2)
    tap_slabs = []
    for kh in range(KH):
        for kw in range(KW):
            tap = lax.slice(
                x_pad,
                (0, 0, kh, kw),
                (N, C_in,
                 kh + stride * (H_out - 1) + 1,
                 kw + stride * (W_out - 1) + 1),
                (1, 1, stride, stride),
            )  # (N, C_in, H_out, W_out)
            if N == 1:
                slab = tap.reshape(C_in, M)                    # (C_in, 1024)
            else:
                slab = jnp.moveaxis(tap, 0, 1).reshape(C_in, M)
            tap_slabs.append(slab)
    # K-order from the concat: (kh, kw, c_in)
    patch_mat = jnp.concatenate(tap_slabs, axis=0)             # (27, M)

    # permute the tiny weight to the same (kh, kw, c_in) K-order
    w_mat = jnp.transpose(weight, (0, 2, 3, 1)).reshape(C_out, K)   # (16, 27)
    b_fused = bias.reshape(C_out, 1) - sub_const                    # (16, 1)

    # ---- Pallas GEMM hot path: single invocation, everything in VMEM ----
    out_flat = pl.pallas_call(
        _conv_gemm_kernel,
        out_shape=jax.ShapeDtypeStruct((C_out, M), jnp.float32),
        in_specs=[
            pl.BlockSpec(memory_space=pltpu.MemorySpace.VMEM),
            pl.BlockSpec(memory_space=pltpu.MemorySpace.VMEM),
            pl.BlockSpec(memory_space=pltpu.MemorySpace.VMEM),
        ],
        out_specs=pl.BlockSpec(memory_space=pltpu.MemorySpace.VMEM),
    )(w_mat, patch_mat, b_fused)

    # (C_out, M) -> NCHW; for N==1 this is a pure reshape (no transpose)
    if N == 1:
        return out_flat.reshape(1, C_out, H_out, W_out)
    out = out_flat.reshape(C_out, N, H_out, W_out)
    return jnp.transpose(out, (1, 0, 2, 3))


# single jit over the whole wrapper: glue + kernel + reshape is one dispatch
conv2d_s2_p1_minus_h = jax.jit(_conv2d_s2_p1_minus_h)


if __name__ == "__main__":
    key = jax.random.PRNGKey(0)
    kx, kw, kb = jax.random.split(key, 3)

    # shapes consistent with the PyTorch module
    x = jax.random.normal(kx, (1, 3, 64, 64), dtype=jnp.float32)
    # deterministic parameter init (PyTorch-style uniform fan-in bound)
    fan_in = 3 * 3 * 3
    bound = 1.0 / (fan_in ** 0.5)
    weight = jax.random.uniform(kw, (16, 3, 3, 3), jnp.float32, -bound, bound)
    bias = jax.random.uniform(kb, (16,), jnp.float32, -bound, bound)

    out = conv2d_s2_p1_minus_h(x, weight, bias)
    out = jax.block_until_ready(out)

    # self-check against XLA conv (silent on success)
    ref = lax.conv_general_dilated(
        x, weight, window_strides=(2, 2), padding=((1, 1), (1, 1)),
        dimension_numbers=("NCHW", "OIHW", "NCHW"),
    ) + bias.reshape(1, -1, 1, 1) - x.shape[2]
    assert out.shape == (1, 16, 32, 32)
    assert jnp.allclose(out, ref, atol=1e-4, rtol=1e-4)

    print("KERNEL_OK")
</pallas_src>

<mosaic_0001>
module attributes {stable_mosaic.version = 11 : i64} {
  func.func @_conv_gemm_kernel(%arg0: memref<16x27xf32, #tpu.memory_space<vmem>>, %arg1: memref<27x1024xf32, #tpu.memory_space<vmem>>, %arg2: memref<16x1xf32, #tpu.memory_space<vmem>>, %arg3: memref<16x1024xf32, #tpu.memory_space<vmem>>) attributes {dimension_semantics = [], scalar_prefetch = 0 : i64, scratch_operands = 0 : i64, tpu.core_type = #tpu.core_type<tc>} {
    %c0 = arith.constant 0 : index
    %c0_0 = arith.constant 0 : index
    %0 = vector.load %arg0[%c0, %c0_0] : memref<16x27xf32, #tpu.memory_space<vmem>>, vector<16x27xf32>
    %c0_1 = arith.constant 0 : index
    %c0_2 = arith.constant 0 : index
    %1 = vector.load %arg1[%c0_1, %c0_2] : memref<27x1024xf32, #tpu.memory_space<vmem>>, vector<27x1024xf32>
    %cst = arith.constant dense<0.000000e+00> : vector<16x1024xf32>
    %2 = tpu.matmul %0, %1, %cst {dimension_numbers = #tpu.dot_dimension_numbers<[1], [0], [0], [1], [0, 0, 1, 1], [], []>} : vector<16x27xf32>, vector<27x1024xf32>, vector<16x1024xf32> -> vector<16x1024xf32>
    %c0_3 = arith.constant 0 : index
    %c0_4 = arith.constant 0 : index
    %3 = vector.load %arg2[%c0_3, %c0_4] : memref<16x1xf32, #tpu.memory_space<vmem>>, vector<16x1xf32>
    %4 = vector.broadcast %3 : vector<16x1xf32> to vector<16x1024xf32>
    %5 = arith.addf %2, %4 : vector<16x1024xf32>
    %c0_5 = arith.constant 0 : index
    %c0_6 = arith.constant 0 : index
    %6 = vector.load %arg3[%c0_5, %c0_6] : memref<16x1024xf32, #tpu.memory_space<vmem>>, vector<16x1024xf32>
    tpu.vector_store %arg3[%c0_5, %c0_6], %5 {strides = array<i32>} : memref<16x1024xf32, #tpu.memory_space<vmem>>, vector<16x1024xf32>,
    return
  }
}

</mosaic_0001>

<bundles_post_ra>
// kernel: _conv2d_s2_p1_minus_h.1
= control target key start
LH: loop header
LB: loop body
LE: loop exit
PB: predicated region body
PF: predicated region fallthrough
CT: control target
= control target key end

     0   :  { %vm67_vm0 = vcmask 1042432   ;;  %v480_v3 = vmov 0.0   ;;  %v481_v8 = vmov 0   ;;  %vm482_vm1 = vmmov 1   ;;  %s696_s1 = inlined_call_operand.vmem [shape: f32[27,1024], index: 1, kind: input, shape index: {}]   ;;  %s697_s0 = inlined_call_operand.vmem [shape: f32[16,27], index: 0, kind: input, shape index: {}]   ;;  %s698_s2 = inlined_call_operand.vmem [shape: f32[16,1], index: 2, kind: input, shape index: {}]   ;;  %s699_s3 = inlined_call_operand.vmem [shape: f32[16,1024], index: 3, kind: output, shape index: {}]  }
   0x1   :  { %v17_v0 = vld [vmem:[%s696_s1 + $0x8] sm:$0xff]  ;;  %v19_v2 = vld [vmem:[%s696_s1 + $0x18] sm:$0xff]  ;;  %156 = vmatprep.mubr.f32.mxu0 %v480_v3  ;;  %233 = vmatprep.mubr.f32.mxu1 %v480_v3  ;;  %v16_v6 = vld [vmem:[%s696_s1] sm:$0xff]  ;;  %vm60_vm3 = vcmask 220160  }
   0x2   :  { %v25_v1 = vld [vmem:[%s696_s1 + $0x48] sm:$0xff]  ;;  %v27_v5 = vld [vmem:[%s696_s1 + $0x58] sm:$0xff]  ;;  %v24_v7 = vld [vmem:[%s696_s1 + $0x40] sm:$0xff]  ;;  %479 = vset.pattern.permute.xlu0 %v481_v8 }
   0x3   :  { %v436_v4 = vpack.c.bf16 %v25_v1, %v17_v0  ;;  %v446_v9 = vpack.c.bf16 %v27_v5, %v19_v2  ;;  %v438_v10 = vpack.c.bf16 %v24_v7, %v16_v6  ;;  %v18_v11 = vld [vmem:[%s696_s1 + $0x10] sm:$0xff]  ;;  %v33_v13 = vld [vmem:[%s696_s1 + $0x88] sm:$0xff]  ;;  %vm536_vm2 = vmpackc.low %vm67_vm0, %vm482_vm1 }
   0x4   :  { %v26_v12 = vld [vmem:[%s696_s1 + $0x50] sm:$0xff]  ;;  %v41_v15 = vld [vmem:[%s696_s1 + $0xc8] sm:$0x7]  ;;  %v35_v17 = vld [vmem:[%s696_s1 + $0x98] sm:$0xff] }
   0x5   :  { %437 = vmatprep.subr.bf16.mxu0 %v436_v4  ;;  %v448_v14 = vpack.c.bf16 %v26_v12, %v18_v11  ;;  %447 = vmatprep.subr.bf16.mxu1 %v446_v9  ;;  %v440_v18 = vpack.c.bf16 %v41_v15, %v33_v13  ;;  %v43_v19 = vld [vmem:[%s696_s1 + $0xd8] sm:$0x7]  ;;  %v32_v20 = vld [vmem:[%s696_s1 + $0x80] sm:$0xff]  ;;  %v34_v24 = vld [vmem:[%s696_s1 + $0x90] sm:$0xff] }
   0x6   :  { %439 = vmatpush1.bf16.msra.mxu0 %v438_v10  ;;  %v40_v21 = vld [vmem:[%s696_s1 + $0xc0] sm:$0x7]  ;;  %v450_v22 = vpack.c.bf16 %v43_v19, %v35_v17  ;;  %v42_v25 = vld [vmem:[%s696_s1 + $0xd0] sm:$0x7]  ;;  %v21_v27 = vld [vmem:[%s696_s1 + $0x28] sm:$0xff] }
   0x7   :  { %449 = vmatpush1.bf16.msra.mxu1 %v448_v14  ;;  %v443_v23 = vpack.c.bf16 %v40_v21, %v32_v20  ;;  %442 = vmatprep.subr.msk.bf16.mxu0 %vm536_vm2, %v440_v18  ;;  %v453_v26 = vpack.c.bf16 %v42_v25, %v34_v24  ;;  %v29_v28 = vld [vmem:[%s696_s1 + $0x68] sm:$0xff]  ;;  %v23_v29 = vld [vmem:[%s696_s1 + $0x38] sm:$0xff]  ;;  %v20_v32 = vld [vmem:[%s696_s1 + $0x20] sm:$0xff] }
   0x8   :  { %452 = vmatprep.subr.msk.bf16.mxu1 %vm536_vm2, %v450_v22  ;;  %v456_v30 = vpack.c.bf16 %v29_v28, %v21_v27  ;;  %v31_v31 = vld [vmem:[%s696_s1 + $0x78] sm:$0xff]  ;;  %v28_v33 = vld [vmem:[%s696_s1 + $0x60] sm:$0xff]  ;;  %v22_v37 = vld [vmem:[%s696_s1 + $0x30] sm:$0xff] }
   0x9   :  { %v14_v34 = vld [vmem:[%s697_s0] sm:$0xff]  ;;  %v466_v35 = vpack.c.bf16 %v31_v31, %v23_v29  ;;  %v458_v36 = vpack.c.bf16 %v28_v33, %v20_v32  ;;  %v30_v38 = vld [vmem:[%s696_s1 + $0x70] sm:$0xff]  ;;  %v37_v40 = vld [vmem:[%s696_s1 + $0xa8] sm:$0xff] }
   0xa   :  { %445 = vmatpush1.bf16.msk.msra.mxu0 %vm536_vm2, %v443_v23  ;;  %v468_v39 = vpack.c.bf16 %v30_v38, %v22_v37  ;;  %v45_v41 = vld [vmem:[%s696_s1 + $0xe8] sm:$0x7]  ;;  %v39_v42 = vld [vmem:[%s696_s1 + $0xb8] sm:$0xff]  ;;  %v36_v45 = vld [vmem:[%s696_s1 + $0xa0] sm:$0xff] }
   0xb   :  { %455 = vmatpush1.bf16.msk.msra.mxu1 %vm536_vm2, %v453_v26  ;;  %457 = vmatprep.subr.bf16.mxu0 %v456_v30  ;;  %v460_v43 = vpack.c.bf16 %v45_v41, %v37_v40  ;;  %v47_v44 = vld [vmem:[%s696_s1 + $0xf8] sm:$0x7]  ;;  %v44_v46 = vld [vmem:[%s696_s1 + $0xe0] sm:$0x7]  ;;  %v38_v48 = vld [vmem:[%s696_s1 + $0xb0] sm:$0xff] }
   0xc   :  { %467 = vmatprep.subr.bf16.mxu1 %v466_v35  ;;  %v470_v47 = vpack.c.bf16 %v47_v44, %v39_v42  ;;  %v46_v49 = vld [vmem:[%s696_s1 + $0xf0] sm:$0x7]  ;;  %v15_v50 = vld [vmem:[%s697_s0 + $0x8] sm:$0xff]  ;;  %v463_v51 = vpack.c.bf16 %v44_v46, %v36_v45  ;;  %v48_v53 = vld [vmem:[%s698_s2] sm:$0xff] }
   0xd   :  { %422 = vmatmul.mubr.msk.f32.vlgmr.msra.gmra.mrb[0].mxu0 %vm60_vm3, %v14_v34  ;;  %v473_v52 = vpack.c.bf16 %v46_v49, %v38_v48  ;;  %52 = vperm.xlu0 %479, %v48_v53   ;;  %v49_v54 = vld [vmem:[%s698_s2 + $0x8] sm:$0xff] }
   0xe   :  { %426 = vmatmul.mubr.msk.f32.vlgmr.msra.gmra.mrb[0].mxu1 %vm60_vm3, %v14_v34  ;;  %459 = vmatpush1.bf16.msra.mxu0 %v458_v36 }
   0xf   :  { %469 = vmatpush1.bf16.msra.mxu1 %v468_v39  ;;  %162 = vmatprep.mubr.f32.mxu0 %v480_v3 }
  0x10   :  { %239 = vmatprep.mubr.f32.mxu1 %v480_v3  ;;  %462 = vmatprep.subr.msk.bf16.mxu0 %vm536_vm2, %v460_v43 }
  0x11   :  { %423 = vmatmul.mubr.msk.f32.gmra.mrb[2].mxu0 %vm60_vm3, %v15_v50  ;;  %472 = vmatprep.subr.msk.bf16.mxu1 %vm536_vm2, %v470_v47 }
  0x12   :  { %427 = vmatmul.mubr.msk.f32.gmra.mrb[2].mxu1 %vm60_vm3, %v15_v50  ;;  %465 = vmatpush1.bf16.msk.msra.mxu0 %vm536_vm2, %v463_v51 }
  0x13   :  { %475 = vmatpush1.bf16.msk.msra.mxu1 %vm536_vm2, %v473_v52  ;;  %310 = vmatprep.mubr.f32.mxu0 %v480_v3 }
  0x14   :  { %387 = vmatprep.mubr.f32.mxu1 %v480_v3  ;;  %57 = vperm.xlu0 %479, %v49_v54  }
  0x15   :  { %430 = vmatmul.mubr.msk.f32.vlgmr.msra.gmra.mrb[4].mxu0 %vm60_vm3, %v14_v34 }
  0x16   :  { %434 = vmatmul.mubr.msk.f32.vlgmr.msra.gmra.mrb[4].mxu1 %vm60_vm3, %v14_v34  ;;  %316 = vmatprep.mubr.f32.mxu0 %v480_v3 }
  0x17   :  { %393 = vmatprep.mubr.f32.mxu1 %v480_v3 }
  0x19   :  { %431 = vmatmul.mubr.msk.f32.gmra.mrb[6].mxu0 %vm60_vm3, %v15_v50 }
  0x1a   :  { %435 = vmatmul.mubr.msk.f32.gmra.mrb[6].mxu1 %vm60_vm3, %v15_v50 }
  0x8c   :  { %v53_v55 = vpop.permute.xlu0 %52 }
  0x93   :  { %v58_v63 = vpop.permute.xlu0 %57 }
  0xe0   :  { %v158_v56 = vpop.f32.mrb[0].mxu0 }
  0xe1   :  { %v235_v57 = vpop.f32.mrb[0].mxu1  ;;  %v159_v58 = vadd.f32 %v158_v56, %v53_v55  ;;  %v160_v59 = vpop.f32.mrb[1].mxu0 }
  0xe2   :  { %v236_v60 = vadd.f32 %v235_v57, %v53_v55  ;;  %v161_v61 = vadd.f32 %v160_v59, %v53_v55  ;;  %v237_v62 = vpop.f32.mrb[1].mxu1 }
  0xe3   :  { %400 = vst [vmem:[%s699_s3] sm:$0xff] %v159_v58  ;;  %v238_v0 = vadd.f32 %v237_v62, %v53_v55 }
  0xe4   :  { %402 = vst [vmem:[%s699_s3 + $0x10] sm:$0xff] %v236_v60  ;;  %401 = vst [vmem:[%s699_s3 + $0x8] sm:$0xff] %v161_v61  ;;  %v164_v1 = vpop.f32.mrb[2].mxu0 }
  0xe5   :  { %403 = vst [vmem:[%s699_s3 + $0x18] sm:$0xff] %v238_v0  ;;  %v241_v2 = vpop.f32.mrb[2].mxu1  ;;  %v165_v3 = vadd.f32 %v164_v1, %v58_v63  ;;  %v166_v4 = vpop.f32.mrb[3].mxu0 }
  0xe6   :  { %v242_v5 = vadd.f32 %v241_v2, %v58_v63  ;;  %v167_v6 = vadd.f32 %v166_v4, %v58_v63  ;;  %v243_v7 = vpop.f32.mrb[3].mxu1 }
  0xe7   :  { %408 = vst [vmem:[%s699_s3 + $0x40] sm:$0xff] %v165_v3  ;;  %v244_v8 = vadd.f32 %v243_v7, %v58_v63 }
  0xe8   :  { %410 = vst [vmem:[%s699_s3 + $0x50] sm:$0xff] %v242_v5  ;;  %409 = vst [vmem:[%s699_s3 + $0x48] sm:$0xff] %v167_v6  ;;  %v312_v9 = vpop.f32.mrb[4].mxu0 }
  0xe9   :  { %411 = vst [vmem:[%s699_s3 + $0x58] sm:$0xff] %v244_v8  ;;  %v313_v10 = vadd.f32 %v312_v9, %v53_v55  ;;  %v389_v11 = vpop.f32.mrb[4].mxu1  ;;  %v314_v12 = vpop.f32.mrb[5].mxu0 }
  0xea   :  { %v390_v13 = vadd.f32 %v389_v11, %v53_v55  ;;  %v315_v14 = vadd.f32 %v314_v12, %v53_v55  ;;  %v391_v15 = vpop.f32.mrb[5].mxu1 }
  0xeb   :  { %404 = vst [vmem:[%s699_s3 + $0x20] sm:$0xff] %v313_v10  ;;  %v392_v16 = vadd.f32 %v391_v15, %v53_v55 }
  0xec   :  { %406 = vst [vmem:[%s699_s3 + $0x30] sm:$0xff] %v390_v13  ;;  %405 = vst [vmem:[%s699_s3 + $0x28] sm:$0xff] %v315_v14  ;;  %v318_v17 = vpop.f32.mrb[6].mxu0 }
  0xed   :  { %407 = vst [vmem:[%s699_s3 + $0x38] sm:$0xff] %v392_v16  ;;  %v319_v18 = vadd.f32 %v318_v17, %v58_v63  ;;  %v395_v19 = vpop.f32.mrb[6].mxu1  ;;  %v320_v20 = vpop.f32.mrb[7].mxu0 }
  0xee   :  { %v396_v21 = vadd.f32 %v395_v19, %v58_v63  ;;  %v321_v22 = vadd.f32 %v320_v20, %v58_v63  ;;  %v397_v23 = vpop.f32.mrb[7].mxu1 }
  0xef   :  { %412 = vst [vmem:[%s699_s3 + $0x60] sm:$0xff] %v319_v18  ;;  %v398_v24 = vadd.f32 %v397_v23, %v58_v63 }
  0xf0   :  { %414 = vst [vmem:[%s699_s3 + $0x70] sm:$0xff] %v396_v21  ;;  %413 = vst [vmem:[%s699_s3 + $0x68] sm:$0xff] %v321_v22 }
  0xf1   :  { %415 = vst [vmem:[%s699_s3 + $0x78] sm:$0xff] %v398_v24 }

</bundles_post_ra>
